<compile_context>
chip_gen: v7x
topology: tpu7x:2x2x1
jax: 0.10.0
libtpu: 0.0.40
codegen_flags: <defaults>
</compile_context>

<pallas_src>
import jax
import jax.numpy as jnp
from jax import lax
from jax.experimental import pallas as pl
from jax.experimental.pallas import tpu as pltpu

BN_EPS = 1e-5                 # nn.BatchNorm2d default
_MAX_LANES = 16384
_MIB = 1024 * 1024


# --------------------------------------------------------------------------- #
# Kernels
# --------------------------------------------------------------------------- #
def _stats_kernel(x_ref, w_ref, o_ref):
    """Accumulate per-image BN partial sums of the (virtual) conv output.

    x_ref: (Cin, TM1)    bf16 pixels, lane axis = flattened (padded) H*W tile
    w_ref: (4*Cout, Cin) bf16 fused tap weights, row = (kh*2+kw)*Cout + co
    o_ref: (4*Cout, 2)   f32 accumulator, VMEM-resident across the m-tile axis:
                         col 0 = sum_m y, col 1 = sum_m y*y
    """
    @pl.when(pl.program_id(2) == 0)
    def _():
        o_ref[...] = jnp.zeros_like(o_ref)

    y = jnp.dot(w_ref[...], x_ref[...],
                preferred_element_type=jnp.float32)            # (4*Cout, TM1)
    o_ref[:, 0:1] += jnp.sum(y, axis=1, keepdims=True)
    o_ref[:, 1:2] += jnp.sum(y * y, axis=1, keepdims=True)


def _apply_kernel(x_ref, w_ref, shift_ref, o_ref):
    """o = relu(W_scaled @ x + shift); the BN scale is folded into W_scaled."""
    y = jnp.dot(w_ref[...], x_ref[...],
                preferred_element_type=jnp.float32)            # (4*Cout, TM2)
    o_ref[...] = jnp.maximum(y + shift_ref[...], 0.0).astype(o_ref.dtype)


# --------------------------------------------------------------------------- #
# Tiling / VMEM planning
# --------------------------------------------------------------------------- #
def _round_up(x, m):
    return ((x + m - 1) // m) * m


def _vmem_capacity_bytes():
    try:
        return int(pltpu.get_tpu_info().vmem_capacity_bytes)
    except Exception:
        return 64 * _MIB          # conservative (v7x per-TensorCore VMEM)


def _plan_tiles(hw, c_in, c_out, tile_budget):
    """Pick lane padding and lane tiles for the stats and apply passes."""
    c4 = 4 * c_out
    # Bytes per lane of the flat H*W axis (double-buffered blocks + f32 y temp).
    per_lane_apply = 2 * 2 * c_in + 2 * 2 * c4 + 4 * c4
    per_lane_stats = 2 * 2 * c_in + 2 * 4 * c4
    cap_apply = max(128, tile_budget // per_lane_apply)
    cap_stats = max(128, tile_budget // per_lane_stats)

    # Apply-pass tile: largest 128*2^k under its cap that needs <= hw/16 lanes
    # of zero padding (padding is real extra compute/write in pass 2).
    tm2 = 128
    t = 128
    while t * 2 <= min(cap_apply, _MAX_LANES):
        t *= 2
        if _round_up(hw, t) - hw <= hw // 16:
            tm2 = t
    hw_pad = _round_up(hw, tm2)

    # Stats-pass tile: largest 128*2^k dividing hw_pad under its (bigger) cap.
    tm1 = 128
    while (tm1 * 2 <= min(cap_stats, hw_pad, _MAX_LANES)
           and hw_pad % (tm1 * 2) == 0):
        tm1 *= 2
    return hw_pad, tm1, tm2


# --------------------------------------------------------------------------- #
# Forward pass
# --------------------------------------------------------------------------- #
@jax.jit
def upconv_layer(x, weight, bias, gamma, beta):
    """x: (N, Cin, H, W).  weight: (Cin, Cout, 2, 2) (ConvTranspose2d layout).
    Returns relu(batchnorm_train(conv_transpose(x))) with shape (N, Cout, 2H, 2W)."""
    del bias  # per-channel conv bias cancels exactly under training-mode BN
    n, c_in, h, w = x.shape
    c_out = weight.shape[1]
    c4 = 4 * c_out
    hw = h * w

    vmem_cap = _vmem_capacity_bytes()
    small_vmem = vmem_cap <= 96 * _MIB            # v7x (64 MiB/TC) vs v5e/v6e (128 MiB)
    vmem_limit = (48 if small_vmem else 96) * _MIB
    tile_budget = (10 if small_vmem else 24) * _MIB
    hw_pad, tm1, tm2 = _plan_tiles(hw, c_in, c_out, tile_budget)

    # x is streamed from HBM by both passes: cast to bf16 once, flatten H*W on
    # the lane axis, zero-pad to the apply-pass tile.
    x_flat = x.reshape(n, c_in, hw).astype(jnp.bfloat16)
    if hw_pad != hw:
        x_flat = jnp.pad(x_flat, ((0, 0), (0, 0), (0, hw_pad - hw)))

    # Fused tap weights: (4*Cout, Cin), row = (kh*2 + kw)*Cout + co.
    w_all = jnp.transpose(weight, (2, 3, 1, 0)).reshape(c4, c_in).astype(jnp.float32)
    w_bf = w_all.astype(jnp.bfloat16)

    mt1 = hw_pad // tm1
    mt2 = hw_pad // tm2
    # v7x megacore: with no batch parallelism, split the stats m-tiles into two
    # parallel groups so both TensorCores get work (partials reduced in XLA).
    g1 = 2 if (n == 1 and mt1 % 2 == 0 and mt1 >= 2) else 1
    mt1_inner = mt1 // g1

    # ---- Pass 1: BN partial sums, accumulated in a VMEM-resident block. ----
    parts = pl.pallas_call(
        _stats_kernel,
        out_shape=jax.ShapeDtypeStruct((n, g1, c4, 2), jnp.float32),
        grid=(n, g1, mt1_inner),
        in_specs=[
            pl.BlockSpec((None, c_in, tm1),
                         lambda i, g, j: (i, 0, g * mt1_inner + j)),
            pl.BlockSpec((c4, c_in), lambda i, g, j: (0, 0)),
        ],
        out_specs=pl.BlockSpec((None, None, c4, 2),
                               lambda i, g, j: (i, g, 0, 0)),
        compiler_params=pltpu.CompilerParams(
            dimension_semantics=("parallel", "parallel", "arbitrary"),
            vmem_limit_bytes=vmem_limit),
    )(x_flat, w_bf)

    # ---- Fold partials into per-channel scale/shift (tiny, pure XLA, f32). ----
    s4 = jnp.sum(parts[..., 0], axis=(0, 1))            # (4*Cout,)
    ss4 = jnp.sum(parts[..., 1], axis=(0, 1))
    s = jnp.sum(s4.reshape(4, c_out), axis=0)           # (Cout,): fold the 4 taps
    ss = jnp.sum(ss4.reshape(4, c_out), axis=0)
    count = jnp.float32(4 * n * hw)                      # N * (2H) * (2W), unpadded
    mean = s / count
    var = ss / count - mean * mean                       # biased variance (BN norm)
    rstd = lax.rsqrt(var + BN_EPS)
    scale = gamma.astype(jnp.float32) * rstd             # (Cout,)
    shift = beta.astype(jnp.float32) - mean * scale
    scale4 = jnp.tile(scale, 4)                          # (4*Cout,): per y row
    shift4 = jnp.tile(shift, 4).reshape(c4, 1)
    # Fold the BN scale into the tap weights so pass 2 is dot + shift + relu.
    w_scaled = (w_all * scale4[:, None]).astype(jnp.bfloat16)

    # ---- Pass 2: recompute conv, normalize + ReLU, write bf16 tap slabs. ----
    out_taps = pl.pallas_call(
        _apply_kernel,
        out_shape=jax.ShapeDtypeStruct((n, c4, hw_pad), jnp.bfloat16),
        grid=(n, mt2),
        in_specs=[
            pl.BlockSpec((None, c_in, tm2), lambda i, j: (i, 0, j)),
            pl.BlockSpec((c4, c_in), lambda i, j: (0, 0)),
            pl.BlockSpec((c4, 1), lambda i, j: (0, 0)),
        ],
        out_specs=pl.BlockSpec((None, c4, tm2), lambda i, j: (i, 0, j)),
        compiler_params=pltpu.CompilerParams(
            dimension_semantics=("parallel", "parallel"),
            vmem_limit_bytes=vmem_limit),
    )(x_flat, w_scaled, shift4)

    # Tap slabs -> NCHW: (N,kh,kw,Cout,H,W) -> (N,Cout,H,kh,W,kw) -> (N,Cout,2H,2W).
    # Reads bf16, writes f32 (the upcast fuses into the transpose).
    # TODO(synk): write NCHW directly from the kernel (needs an in-kernel
    # channels-sublane -> channels-major relayout / interleaved stores).
    out_taps = out_taps[:, :, :hw]
    out = out_taps.reshape(n, 2, 2, c_out, h, w)
    out = jnp.transpose(out, (0, 3, 4, 1, 5, 2)).astype(jnp.float32)
    return out.reshape(n, c_out, 2 * h, 2 * w)


# --------------------------------------------------------------------------- #
# Reference + self-check
# --------------------------------------------------------------------------- #
def _reference_forward(x, weight, bias, gamma, beta):
    """Pure-JAX f32 reference of the same forward pass (training-mode BN)."""
    n, c_in, h, w = x.shape
    c_out = weight.shape[1]
    y = jnp.einsum('ncij,cdkl->ndikjl', x, weight)           # (N,Cout,H,2,W,2)
    y = y.reshape(n, c_out, 2 * h, 2 * w) + bias[None, :, None, None]
    mean = jnp.mean(y, axis=(0, 2, 3), keepdims=True)
    var = jnp.mean((y - mean) ** 2, axis=(0, 2, 3), keepdims=True)
    y = (y - mean) * lax.rsqrt(var + BN_EPS)
    y = y * gamma[None, :, None, None] + beta[None, :, None, None]
    return jnp.maximum(y, 0.0)


if __name__ == "__main__":
    N, C_IN, C_OUT, H, W = 2, 4, 8, 16, 16

    key = jax.random.PRNGKey(0)
    kx, kw, kb, kg, kbe = jax.random.split(key, 5)

    x = jax.random.normal(kx, (N, C_IN, H, W), dtype=jnp.float32)
    # ConvTranspose2d weight shape: (in_channels, out_channels, 2, 2)
    bound = 1.0 / jnp.sqrt(C_IN * 2 * 2)
    weight = jax.random.uniform(kw, (C_IN, C_OUT, 2, 2), jnp.float32, -bound, bound)
    bias = jax.random.uniform(kb, (C_OUT,), jnp.float32, -bound, bound)
    gamma = 0.5 + jax.random.uniform(kg, (C_OUT,), jnp.float32)   # BN weight
    beta = 0.1 * jax.random.normal(kbe, (C_OUT,), jnp.float32)    # BN bias

    out = upconv_layer(x, weight, bias, gamma, beta)
    out = jax.block_until_ready(out)

    ref = _reference_forward(x, weight, bias, gamma, beta)
    assert out.shape == (N, C_OUT, 2 * H, 2 * W), out.shape
    # bf16 MXU operands / bf16 intermediate output vs. pure-f32 reference.
    if not jnp.allclose(out, ref, rtol=5e-2, atol=5e-2):
        max_err = jnp.max(jnp.abs(out - ref))
        raise AssertionError(f"Pallas kernel does not match reference (max err {max_err})")

    print("KERNEL_OK")
</pallas_src>

<mosaic_0001>
module attributes {stable_mosaic.version = 11 : i64} {
  func.func @_stats_kernel(%arg0: i32, %arg1: i32, %arg2: i32, %arg3: memref<1x4x256xbf16, #tpu.memory_space<vmem>>, %arg4: memref<32x4xbf16, #tpu.memory_space<vmem>>, %arg5: memref<1x1x32x2xf32, #tpu.memory_space<vmem>>) attributes {dimension_semantics = [#tpu.dimension_semantics<parallel>, #tpu.dimension_semantics<parallel>, #tpu.dimension_semantics<arbitrary>], iteration_bounds = array<i64: 2, 1, 1>, scalar_prefetch = 0 : i64, scratch_operands = 0 : i64, tpu.core_type = #tpu.core_type<tc>, window_params = [{transform_indices = @transform_0, window_bounds = array<i64: 1, 4, 256>}, {pipeline_mode = #tpu.pipeline_mode<synchronous>, transform_indices = @transform_1, window_bounds = array<i64: 32, 4>}, {transform_indices = @transform_2, window_bounds = array<i64: 1, 1, 32, 2>}]} {
    %c0_i32 = arith.constant 0 : i32
    %0 = arith.cmpi eq, %arg2, %c0_i32 : i32
    %1 = arith.extui %0 : i1 to i32
    %c0_i32_0 = arith.constant 0 : i32
    %2 = arith.cmpi ne, %1, %c0_i32_0 : i32
    scf.if %2 {
      %cst_22 = arith.constant 0.000000e+00 : f32
      %24 = vector.broadcast %cst_22 : f32 to vector<32x2xf32>
      %c0_23 = arith.constant 0 : index
      %c0_24 = arith.constant 0 : index
      %c0_25 = arith.constant 0 : index
      %c0_26 = arith.constant 0 : index
      %25 = vector.load %arg5[%c0_23, %c0_24, %c0_25, %c0_26] : memref<1x1x32x2xf32, #tpu.memory_space<vmem>>, vector<1x1x32x2xf32>
      %26 = vector.shape_cast %25 : vector<1x1x32x2xf32> to vector<32x2xf32>
      %27 = vector.shape_cast %24 : vector<32x2xf32> to vector<1x1x32x2xf32>
      tpu.vector_store %arg5[%c0_23, %c0_24, %c0_25, %c0_26], %27 {strides = array<i32>} : memref<1x1x32x2xf32, #tpu.memory_space<vmem>>, vector<1x1x32x2xf32>,
    } else {
    }
    %c0 = arith.constant 0 : index
    %c0_1 = arith.constant 0 : index
    %3 = vector.load %arg4[%c0, %c0_1] : memref<32x4xbf16, #tpu.memory_space<vmem>>, vector<32x4xbf16>
    %c0_2 = arith.constant 0 : index
    %c0_3 = arith.constant 0 : index
    %c0_4 = arith.constant 0 : index
    %4 = vector.load %arg3[%c0_2, %c0_3, %c0_4] : memref<1x4x256xbf16, #tpu.memory_space<vmem>>, vector<1x4x256xbf16>
    %5 = vector.shape_cast %4 : vector<1x4x256xbf16> to vector<4x256xbf16>
    %cst = arith.constant dense<0.000000e+00> : vector<32x256xf32>
    %6 = tpu.matmul %3, %5, %cst {dimension_numbers = #tpu.dot_dimension_numbers<[1], [0], [0], [1], [0, 0, 1, 1], [], []>} : vector<32x4xbf16>, vector<4x256xbf16>, vector<32x256xf32> -> vector<32x256xf32>
    %c0_5 = arith.constant 0 : index
    %c0_6 = arith.constant 0 : index
    %c0_7 = arith.constant 0 : index
    %c0_8 = arith.constant 0 : index
    %7 = vector.load %arg5[%c0_5, %c0_6, %c0_7, %c0_8] : memref<1x1x32x2xf32, #tpu.memory_space<vmem>>, vector<1x1x32x1xf32>
    %8 = vector.shape_cast %7 : vector<1x1x32x1xf32> to vector<32x1xf32>
    %cst_9 = arith.constant dense<0.000000e+00> : vector<32xf32>
    %9 = vector.multi_reduction <add>, %6, %cst_9 [1] : vector<32x256xf32> to vector<32xf32>
    %10 = vector.shape_cast %9 : vector<32xf32> to vector<32x1xf32>
    %11 = arith.addf %8, %10 : vector<32x1xf32>
    %c0_10 = arith.constant 0 : index
    %c0_11 = arith.constant 0 : index
    %c0_12 = arith.constant 0 : index
    %c0_13 = arith.constant 0 : index
    %12 = vector.load %arg5[%c0_10, %c0_11, %c0_12, %c0_13] : memref<1x1x32x2xf32, #tpu.memory_space<vmem>>, vector<1x1x32x1xf32>
    %13 = vector.shape_cast %12 : vector<1x1x32x1xf32> to vector<32x1xf32>
    %14 = vector.shape_cast %11 : vector<32x1xf32> to vector<1x1x32x1xf32>
    tpu.vector_store %arg5[%c0_10, %c0_11, %c0_12, %c0_13], %14 {strides = array<i32>} : memref<1x1x32x2xf32, #tpu.memory_space<vmem>>, vector<1x1x32x1xf32>,
    %c0_14 = arith.constant 0 : index
    %c0_15 = arith.constant 0 : index
    %c0_16 = arith.constant 0 : index
    %c1 = arith.constant 1 : index
    %15 = vector.load %arg5[%c0_14, %c0_15, %c0_16, %c1] : memref<1x1x32x2xf32, #tpu.memory_space<vmem>>, vector<1x1x32x1xf32>
    %16 = vector.shape_cast %15 : vector<1x1x32x1xf32> to vector<32x1xf32>
    %17 = arith.mulf %6, %6 : vector<32x256xf32>
    %cst_17 = arith.constant dense<0.000000e+00> : vector<32xf32>
    %18 = vector.multi_reduction <add>, %17, %cst_17 [1] : vector<32x256xf32> to vector<32xf32>
    %19 = vector.shape_cast %18 : vector<32xf32> to vector<32x1xf32>
    %20 = arith.addf %16, %19 : vector<32x1xf32>
    %c0_18 = arith.constant 0 : index
    %c0_19 = arith.constant 0 : index
    %c0_20 = arith.constant 0 : index
    %c1_21 = arith.constant 1 : index
    %21 = vector.load %arg5[%c0_18, %c0_19, %c0_20, %c1_21] : memref<1x1x32x2xf32, #tpu.memory_space<vmem>>, vector<1x1x32x1xf32>
    %22 = vector.shape_cast %21 : vector<1x1x32x1xf32> to vector<32x1xf32>
    %23 = vector.shape_cast %20 : vector<32x1xf32> to vector<1x1x32x1xf32>
    tpu.vector_store %arg5[%c0_18, %c0_19, %c0_20, %c1_21], %23 {strides = array<i32>} : memref<1x1x32x2xf32, #tpu.memory_space<vmem>>, vector<1x1x32x1xf32>,
    return
  }
  func.func @transform_0(%arg0: i32, %arg1: i32, %arg2: i32) -> (i32, i32, i32) {
    %c1_i32 = arith.constant 1 : i32
    %0 = arith.muli %arg1, %c1_i32 : i32
    %1 = arith.addi %0, %arg2 : i32
    %c0_i32 = arith.constant 0 : i32
    %c0_i32_0 = arith.constant 0 : i32
    return %arg0, %c0_i32, %1 : i32, i32, i32
  }
  func.func @transform_1(%arg0: i32, %arg1: i32, %arg2: i32) -> (i32, i32) {
    %c0_i32 = arith.constant 0 : i32
    %c0_i32_0 = arith.constant 0 : i32
    %c0_i32_1 = arith.constant 0 : i32
    return %c0_i32, %c0_i32_0 : i32, i32
  }
  func.func @transform_2(%arg0: i32, %arg1: i32, %arg2: i32) -> (i32, i32, i32, i32) {
    %c0_i32 = arith.constant 0 : i32
    %c0_i32_0 = arith.constant 0 : i32
    %c0_i32_1 = arith.constant 0 : i32
    return %arg0, %arg1, %c0_i32, %c0_i32_0 : i32, i32, i32, i32
  }
}

module attributes {stable_mosaic.version = 11 : i64} {
  func.func @_apply_kernel(%arg0: i32, %arg1: i32, %arg2: memref<1x4x256xbf16, #tpu.memory_space<vmem>>, %arg3: memref<32x4xbf16, #tpu.memory_space<vmem>>, %arg4: memref<32x1xf32, #tpu.memory_space<vmem>>, %arg5: memref<1x32x256xbf16, #tpu.memory_space<vmem>>) attributes {dimension_semantics = [#tpu.dimension_semantics<parallel>, #tpu.dimension_semantics<parallel>], iteration_bounds = array<i64: 2, 1>, scalar_prefetch = 0 : i64, scratch_operands = 0 : i64, tpu.core_type = #tpu.core_type<tc>, window_params = [{transform_indices = @transform_0, window_bounds = array<i64: 1, 4, 256>}, {pipeline_mode = #tpu.pipeline_mode<synchronous>, transform_indices = @transform_1, window_bounds = array<i64: 32, 4>}, {pipeline_mode = #tpu.pipeline_mode<synchronous>, transform_indices = @transform_2, window_bounds = array<i64: 32, 1>}, {transform_indices = @transform_3, window_bounds = array<i64: 1, 32, 256>}]} {
    %c0 = arith.constant 0 : index
    %c0_0 = arith.constant 0 : index
    %0 = vector.load %arg3[%c0, %c0_0] : memref<32x4xbf16, #tpu.memory_space<vmem>>, vector<32x4xbf16>
    %c0_1 = arith.constant 0 : index
    %c0_2 = arith.constant 0 : index
    %c0_3 = arith.constant 0 : index
    %1 = vector.load %arg2[%c0_1, %c0_2, %c0_3] : memref<1x4x256xbf16, #tpu.memory_space<vmem>>, vector<1x4x256xbf16>
    %2 = vector.shape_cast %1 : vector<1x4x256xbf16> to vector<4x256xbf16>
    %cst = arith.constant dense<0.000000e+00> : vector<32x256xf32>
    %3 = tpu.matmul %0, %2, %cst {dimension_numbers = #tpu.dot_dimension_numbers<[1], [0], [0], [1], [0, 0, 1, 1], [], []>} : vector<32x4xbf16>, vector<4x256xbf16>, vector<32x256xf32> -> vector<32x256xf32>
    %c0_4 = arith.constant 0 : index
    %c0_5 = arith.constant 0 : index
    %4 = vector.load %arg4[%c0_4, %c0_5] : memref<32x1xf32, #tpu.memory_space<vmem>>, vector<32x1xf32>
    %5 = vector.broadcast %4 : vector<32x1xf32> to vector<32x256xf32>
    %6 = arith.addf %3, %5 : vector<32x256xf32>
    %cst_6 = arith.constant 0.000000e+00 : f32
    %7 = vector.broadcast %cst_6 : f32 to vector<32x256xf32>
    %8 = arith.maximumf %6, %7 : vector<32x256xf32>
    %9 = arith.truncf %8 : vector<32x256xf32> to vector<32x256xbf16>
    %c0_7 = arith.constant 0 : index
    %c0_8 = arith.constant 0 : index
    %c0_9 = arith.constant 0 : index
    %10 = vector.load %arg5[%c0_7, %c0_8, %c0_9] : memref<1x32x256xbf16, #tpu.memory_space<vmem>>, vector<1x32x256xbf16>
    %11 = vector.shape_cast %10 : vector<1x32x256xbf16> to vector<32x256xbf16>
    %12 = vector.shape_cast %9 : vector<32x256xbf16> to vector<1x32x256xbf16>
    tpu.vector_store %arg5[%c0_7, %c0_8, %c0_9], %12 {strides = array<i32>} : memref<1x32x256xbf16, #tpu.memory_space<vmem>>, vector<1x32x256xbf16>,
    return
  }
  func.func @transform_0(%arg0: i32, %arg1: i32) -> (i32, i32, i32) {
    %c0_i32 = arith.constant 0 : i32
    %c0_i32_0 = arith.constant 0 : i32
    return %arg0, %c0_i32, %arg1 : i32, i32, i32
  }
  func.func @transform_1(%arg0: i32, %arg1: i32) -> (i32, i32) {
    %c0_i32 = arith.constant 0 : i32
    %c0_i32_0 = arith.constant 0 : i32
    %c0_i32_1 = arith.constant 0 : i32
    return %c0_i32, %c0_i32_0 : i32, i32
  }
  func.func @transform_2(%arg0: i32, %arg1: i32) -> (i32, i32) {
    %c0_i32 = arith.constant 0 : i32
    %c0_i32_0 = arith.constant 0 : i32
    %c0_i32_1 = arith.constant 0 : i32
    return %c0_i32, %c0_i32_0 : i32, i32
  }
  func.func @transform_3(%arg0: i32, %arg1: i32) -> (i32, i32, i32) {
    %c0_i32 = arith.constant 0 : i32
    %c0_i32_0 = arith.constant 0 : i32
    return %arg0, %c0_i32, %arg1 : i32, i32, i32
  }
}

</mosaic_0001>

<bundles_post_ra>
// kernel: tile.17
= control target key start
LH: loop header
LB: loop body
LE: loop exit
PB: predicated region body
PF: predicated region fallthrough
CT: control target
= control target key end

     0   :  { %s22_s0 = inlined_call_operand.vmem [shape: f32[8], index: 0, kind: input, shape index: {}]   ;;  %s23_s1 = inlined_call_operand.vmem [shape: f32[4,8], index: 1, kind: output, shape index: {}]  }
   0x1   :  { %v4_v0 = vld [vmem:[%s22_s0] ss:$0 sm:$0xff] }
   0x2   :  { %5 = vst [vmem:[%s23_s1] sm:$0xf] %v4_v0 }

// kernel: mul.11
= control target key start
LH: loop header
LB: loop body
LE: loop exit
PB: predicated region body
PF: predicated region fallthrough
CT: control target
= control target key end

     0   :  { %vm7_vm0 = vcmask 64512   ;;  %s37_s8 = smov 8   ;;  %s38_s9 = smov 16   ;;  %vm13_vm1 = vcmask 261312   ;;  %vm19_vm2 = vcmask 195712   ;;  %vm25_vm3 = vcmask 130112   ;;  %s55_s0 = inlined_call_operand.vmem [shape: f32[4,8], index: 0, kind: input, shape index: {}]   ;;  %s56_s1 = inlined_call_operand.vmem [shape: f32[32], index: 1, kind: output, shape index: {}]  }
   0x1   :  { %v4_v0 = vld [vmem:[%s55_s0] sm:$0xf]  ;;  %s36_s0 = smov 24  }
   0x2   :  { %5 = vst [vmem:[#allocation1] sm:$0xf] %v4_v0 }
   0x9   :  { %v10_v1 = vld [vmem:[#allocation1 + $0x3] sm:$0x1]   ;;  %v22_v2 = vld [vmem:[#allocation1 + $0x1] sm:$0x1]   ;;  %v6_v3 = vld [vmem:[#allocation1] sm:$0x1]  }
   0xa   :  { %11 = vrot.lane.b32.xlu0 %v10_v1, %s36_s0  ;;  %23 = vrot.lane.b32.xlu1 %v22_v2, %s37_s8  ;;  %v16_v4 = vld [vmem:[#allocation1 + $0x2] sm:$0x1]   ;;  %8 = vst.msk [vmem:[#allocation0] sm:$0x1] %vm7_vm0, %v6_v3  }
   0xe   :  { %17 = vrot.lane.b32.xlu0 %v16_v4, %s38_s9 }
  0x7c   :  { %v12_v5 = vpop.permute.xlu0 %11   ;;  %v24_v6 = vpop.permute.xlu1 %23  }
  0x7d   :  { %14 = vst.msk [vmem:[#allocation0] sm:$0x1] %vm13_vm1, %v12_v5  }
  0x80   :  { %v18_v7 = vpop.permute.xlu0 %17  }
  0x81   :  { %20 = vst.msk [vmem:[#allocation0] sm:$0x1] %vm19_vm2, %v18_v7  }
  0x82   :  { %26 = vst.msk [vmem:[#allocation0] sm:$0x1] %vm25_vm3, %v24_v6  }
  0x89   :  { %v30_v8 = vld [vmem:[#allocation0] sm:$0x1] }
  0x8a   :  { %32 = vst [vmem:[%s56_s1] sm:$0x1] %v30_v8 }

// kernel: tile.0
= control target key start
LH: loop header
LB: loop body
LE: loop exit
PB: predicated region body
PF: predicated region fallthrough
CT: control target
= control target key end

     0   :  { %s66_s8 = smov 125   ;;  %vm7_vm0 = vcmask 7168   ;;  %s67_s11 = smov 126   ;;  %s117_s0 = inlined_call_operand.vmem [shape: f32[4,8], index: 0, kind: input, shape index: {}]   ;;  %s118_s1 = inlined_call_operand.vmem [shape: f32[32,1], index: 1, kind: output, shape index: {}]  }
   0x1   :  { %v4_v0 = vld [vmem:[%s117_s0] sm:$0xf]  ;;  %s65_s0 = smov 127   ;;  %s68_s12 = smov 124  }
   0x2   :  { %5 = vst [vmem:[#allocation0] sm:$0xf] %v4_v0  ;;  %s69_s13 = smov 123   ;;  %s70_s14 = smov 122  }
   0x3   :  { %s71_s15 = smov 121  }
   0x9   :  { %v9_v1 = vld [vmem:[#allocation0] sm:$0xf]  }
   0xa   :  { %v21_v2 = vld [vmem:[#allocation0] sm:$0xf]   ;;  %10 = vrot.lane.b32.xlu0 %v9_v1, %s65_s0 }
   0xb   :  { %22 = vrot.lane.b32.xlu1 %v21_v2, %s66_s8  ;;  %v15_v3 = vld [vmem:[#allocation0] sm:$0xf]  }
   0xc   :  { %v27_v4 = vld [vmem:[#allocation0] sm:$0xf]  }
   0xd   :  { %v6_v5 = vld [vmem:[#allocation0] sm:$0xf]  }
   0xe   :  { %8 = vst.msk [vmem:[%s118_s1] ss:$8 sm:$0xf] %vm7_vm0, %v6_v5   ;;  %16 = vrot.lane.b32.xlu0 %v15_v3, %s67_s11  ;;  %v33_v6 = vld [vmem:[#allocation0] sm:$0xf]  }
   0xf   :  { %28 = vrot.lane.b32.xlu1 %v27_v4, %s68_s12  ;;  %v39_v7 = vld [vmem:[#allocation0] sm:$0xf]  }
  0x10   :  { %v45_v8 = vld [vmem:[#allocation0] sm:$0xf]  }
  0x12   :  { %34 = vrot.lane.b32.xlu0 %v33_v6, %s69_s13 }
  0x13   :  { %40 = vrot.lane.b32.xlu1 %v39_v7, %s70_s14 }
  0x16   :  { %46 = vrot.lane.b32.xlu0 %v45_v8, %s71_s15 }
  0x7c   :  { %v11_v9 = vpop.permute.xlu0 %10  }
  0x7d   :  { %v23_v10 = vpop.permute.xlu1 %22   ;;  %51 = vst.msk [vmem:[%s118_s1 + $0x1] ss:$8 sm:$0xf] %vm7_vm0, %v11_v9  }
  0x7e   :  { %53 = vst.msk [vmem:[%s118_s1 + $0x3] ss:$8 sm:$0xf] %vm7_vm0, %v23_v10  }
  0x80   :  { %v17_v11 = vpop.permute.xlu0 %16  }
  0x81   :  { %v29_v12 = vpop.permute.xlu1 %28   ;;  %52 = vst.msk [vmem:[%s118_s1 + $0x2] ss:$8 sm:$0xf] %vm7_vm0, %v17_v11  }
  0x82   :  { %54 = vst.msk [vmem:[%s118_s1 + $0x4] ss:$8 sm:$0xf] %vm7_vm0, %v29_v12  }
  0x84   :  { %v35_v13 = vpop.permute.xlu0 %34  }
  0x85   :  { %v41_v14 = vpop.permute.xlu1 %40   ;;  %55 = vst.msk [vmem:[%s118_s1 + $0x5] ss:$8 sm:$0xf] %vm7_vm0, %v35_v13  }
  0x86   :  { %56 = vst.msk [vmem:[%s118_s1 + $0x6] ss:$8 sm:$0xf] %vm7_vm0, %v41_v14  }
  0x88   :  { %v47_v15 = vpop.permute.xlu0 %46  }
  0x89   :  { %57 = vst.msk [vmem:[%s118_s1 + $0x7] ss:$8 sm:$0xf] %vm7_vm0, %v47_v15  }

// kernel: upconv_layer.3
= control target key start
LH: loop header
LB: loop body
LE: loop exit
PB: predicated region body
PF: predicated region fallthrough
CT: control target
= control target key end

     0   :  { %s552_s12 = smov 0   ;;  %s554_s13 = smov 0   ;;  %s607_s0 = inlined_call_operand.vmem [shape: bf16[2,4,256], index: 0, kind: input, shape index: {}]   ;;  %s608_s1 = inlined_call_operand.vmem [shape: bf16[32,4], index: 1, kind: input, shape index: {}]   ;;  %s609_s2 = inlined_call_operand.vmem [shape: f32[32,1], index: 2, kind: input, shape index: {}]   ;;  %s610_s3 = inlined_call_operand.vmem [shape: bf16[2,32,256], index: 3, kind: output, shape index: {}]  }
   0x1   :  { %s556_s14 = smov 0  }
   0x2 LB: > { %s25_s15 = sadd.s32 1, %s525_s13  ;;  %p453_p0 = scmp.ge.s32.totalorder %s529_s14, 1  ;;  %s529_s14 = sphi %s556_s14, %s13_s14   ;;  %s525_s13 = sphi %s554_s13, %s612_s13   ;;  %s521_s12 = sphi %s552_s12, %s611_s12  }
   0x3   : > { %p27_p1 = scmp.ge.s32.totalorder %s25_s15, 2  ;;  %p158_p2 = scmp.lt.s32.totalorder %s529_s14, 3 }
   0x5   : > { %s614_s15 = smov (%p27_p1, %s25_s15), 0  ;;  %p159_p3 = pnand %p453_p0, %p158_p2 }
   0x6   : > { %p191_p4 = scmp.lt.s32.totalorder (!%p159_p3), %s521_s12, 1  ;;  %v531_v0 = vmov (!%p159_p3), 0   ;;  %v218_v1 = vld [vmem:[%s609_s2 + $0x10] sm:$0xff] (!%p159_p3)  ;;  %v216_v2 = vld [vmem:[%s609_s2] sm:$0xff] (!%p159_p3)  ;;  %vm266_vm0 = vcmask (!%p159_p3), 1041408   ;;  %v219_v3 = vld [vmem:[%s609_s2 + $0x18] sm:$0xff] (!%p159_p3) }
   0x7   : > { %162 = sbr.rel (%p159_p3) target bundleno = 246 (0xf6), region = 32  ;;  %305 = vmatprep.mubr.bf16.mxu0 (!%p159_p3), %v531_v0  ;;  %315 = vmatprep.mubr.bf16.mxu1 (!%p159_p3), %v531_v0  ;;  %v217_v4 = vld [vmem:[%s609_s2 + $0x8] sm:$0xff] (!%p159_p3)  ;;  %v505_v8 = vld [vmem:[%s608_s1] sm:$0xff] (!%p159_p3)   ;;  %vm259_vm1 = vcmask (!%p159_p3), 31744  }
   0x8   : > { %504 = vset.pattern.permute.xlu1 (!%p159_p3), %v531_v0  ;;  %503 = vset.pattern.permute.xlu0 (!%p159_p3), %v531_v0  ;;  %v506_v9 = vld [vmem:[%s608_s1 + $0x8] sm:$0xff] (!%p159_p3)  }
   0x9   : > { %232 = vperm.xlu1 (!%p159_p3), %504, %v218_v1   ;;  %222 = vperm.xlu0 (!%p159_p3), %503, %v216_v2  }
   0xd   : > { %237 = vperm.xlu1 (!%p159_p3), %504, %v219_v3   ;;  %227 = vperm.xlu0 (!%p159_p3), %503, %v217_v4  }
   0xe   : > { %s616_s12 = smov (!%p191_p4, %s521_s12), 1 }
   0xf   : > { %s470_s20 = sshll.u32 %s616_s12, 2  ;;  %s471_s5 = sshll.u32 %s616_s12, 5 }
  0x10   : > { %s198_s27 = scalar_lea.vmem %s607_s0, %s470_s20  ;;  %s208_s8 = scalar_lea.vmem %s610_s3, %s471_s5 }
  0x11   : > { %v460_v5 = vld.sshfl [vmem:[%s198_s27] sm:$0x33 pattern:$0x76325410] }
  0x12   : > { %v258_v6 = vcombine.high %v460_v5, %v460_v5  ;;  %v268_v7 = vsel %vm266_vm0, %v460_v5, 0 }
  0x14   : > { %461 = vmatprep.subr.msk.bf16.mxu0 %vm266_vm0, %v258_v6  ;;  %476 = vmatprep.subr.msk.bf16.mxu1 %vm266_vm0, %v258_v6 }
  0x15   : > { %274 = vmatpush1.bf16.msra.mxu0 %v268_v7  ;;  %477 = vmatpush1.bf16.msra.mxu1 %v268_v7 }
  0x18   : > { %462 = vmatmul.mubr.msk.bf16.vlgmr.msra.gmra.mrb[0].mxu0 %vm259_vm1, %v505_v8  ;;  %463 = vmatmul.mubr.msk.bf16.vlgmr.msra.gmra.mrb[0].mxu1 %vm259_vm1, %v506_v9 }
  0x88   : > { %v233_v10 = vpop.permute.xlu1 %232  ;;  %v223_v11 = vpop.permute.xlu0 %222 }
  0x8c   : > { %v238_v12 = vpop.permute.xlu1 %237  ;;  %v228_v13 = vpop.permute.xlu0 %227 }
  0xeb   : > { %v307_v14 = vpop.f32.mrb[0].mxu0  ;;  %v317_v15 = vpop.f32.mrb[0].mxu1 }
  0xec   : > { %v308_v16 = vadd.f32 %v307_v14, %v223_v11  ;;  %v318_v17 = vadd.f32 %v317_v15, %v233_v10  ;;  %v309_v18 = vpop.f32.mrb[1].mxu0  ;;  %v319_v19 = vpop.f32.mrb[1].mxu1 }
  0xed   : > { %v310_v20 = vadd.f32 %v309_v18, %v223_v11  ;;  %v320_v21 = vadd.f32 %v319_v19, %v233_v10  ;;  %v311_v22 = vpop.f32.mrb[2].mxu0  ;;  %v321_v23 = vpop.f32.mrb[2].mxu1 }
  0xee   : > { %v326_v24 = vmax.f32 %v308_v16, 0.0  ;;  %v330_v25 = vmax.f32 %v318_v17, 0.0  ;;  %v312_v26 = vadd.f32 %v311_v22, %v228_v13  ;;  %v322_v27 = vadd.f32 %v321_v23, %v238_v12  ;;  %v313_v28 = vpop.f32.mrb[3].mxu0  ;;  %v323_v29 = vpop.f32.mrb[3].mxu1 }
  0xef   : > { %v327_v30 = vmax.f32 %v310_v20, 0.0  ;;  %v331_v31 = vmax.f32 %v320_v21, 0.0  ;;  %v314_v32 = vadd.f32 %v313_v28, %v228_v13  ;;  %v324_v33 = vadd.f32 %v323_v29, %v238_v12 }
  0xf0   : > { %v328_v34 = vmax.f32 %v312_v26, 0.0  ;;  %v332_v35 = vmax.f32 %v322_v27, 0.0 }
  0xf1   : > { %v472_v36 = vpack.c.bf16 %v327_v30, %v326_v24  ;;  %v474_v37 = vpack.c.bf16 %v331_v31, %v330_v25  ;;  %v329_v38 = vmax.f32 %v314_v32, 0.0  ;;  %v333_v39 = vmax.f32 %v324_v33, 0.0 }
  0xf3   : > { %358 = vst [vmem:[%s208_s8] sm:$0xff] %v472_v36  ;;  %360 = vst [vmem:[%s208_s8 + $0x10] sm:$0xff] %v474_v37  ;;  %v473_v40 = vpack.c.bf16 %v329_v38, %v328_v34  ;;  %v475_v41 = vpack.c.bf16 %v333_v39, %v332_v35 }
  0xf5   : > { %359 = vst [vmem:[%s208_s8 + $0x8] sm:$0xff] %v473_v40  ;;  %361 = vst [vmem:[%s208_s8 + $0x18] sm:$0xff] %v475_v41 }
  0xf6 PF: > { %s13_s14 = sadd.s32 1, %s529_s14   ;;  %s611_s12 = smov %s525_s13 }
  0xf7   : > { %p10_p5 = scmp.ge.s32.totalorder %s13_s14, 4   ;;  %s612_s13 = smov %s614_s15 }
  0xf9   :  { %12 = sbr.rel (!%p10_p5) target bundleno = 2 (0x2), region = 62 }

// kernel: upconv_layer.2
= control target key start
LH: loop header
LB: loop body
LE: loop exit
PB: predicated region body
PF: predicated region fallthrough
CT: control target
= control target key end

     0   :  { %s537_s9 = smov 0   ;;  %s539_s10 = smov 0   ;;  %s598_s0 = inlined_call_operand.vmem [shape: bf16[2,4,256], index: 0, kind: input, shape index: {}]   ;;  %s599_s1 = inlined_call_operand.vmem [shape: bf16[32,4], index: 1, kind: input, shape index: {}]   ;;  %s600_s2 = inlined_call_operand.vmem [shape: f32[2,1,32,2], index: 2, kind: output, shape index: {}]  }
   0x1   :  { %s541_s11 = smov 0  }
   0x2 LB: > { %s31_s12 = sadd.s32 1, %s514_s10  ;;  %p451_p0 = scmp.ge.s32.totalorder %s518_s11, 1  ;;  %s518_s11 = sphi %s541_s11, %s12_s11   ;;  %s514_s10 = sphi %s539_s10, %s602_s10   ;;  %s510_s9 = sphi %s537_s9, %s601_s9  }
   0x3   : > { %p33_p1 = scmp.ge.s32.totalorder %s31_s12, 2  ;;  %p144_p2 = scmp.lt.s32.totalorder %s518_s11, 3 }
   0x5   : > { %s604_s12 = smov (%p33_p1, %s31_s12), 0  ;;  %p145_p3 = pnand %p451_p0, %p144_p2 }
   0x6   : > { %p177_p4 = scmp.lt.s32.totalorder (!%p145_p3), %s510_s9, 1  ;;  %v520_v0 = vmov (!%p145_p3), 0   ;;  %vm237_vm0 = vcmask (!%p145_p3), 1041408   ;;  %v494_v4 = vld [vmem:[%s599_s1] sm:$0xff] (!%p145_p3)   ;;  %v495_v5 = vld [vmem:[%s599_s1 + $0x8] sm:$0xff] (!%p145_p3)   ;;  %vm230_vm1 = vcmask (!%p145_p3), 31744  }
   0x7   : > { %148 = sbr.rel (%p145_p3) target bundleno = 399 (0x18f), region = 28  ;;  %276 = vmatprep.mubr.bf16.mxu0 (!%p145_p3), %v520_v0  ;;  %286 = vmatprep.mubr.bf16.mxu1 (!%p145_p3), %v520_v0  ;;  %vm201_vm2 = vcmask (!%p145_p3), 15360   ;;  %v521_v6 = vmov (!%p145_p3), 0.0   ;;  %vm317_vm3 = vcmask (!%p145_p3), 7168   ;;  %vm350_vm4 = vcmask (!%p145_p3), 15368  }
   0xe   : > { %s606_s9 = smov (!%p177_p4, %s510_s9), 1 }
   0xf   : > { %s464_s13 = sshll.u32 %s606_s9, 2  ;;  %s465_s21 = sshll.u32 %s606_s9, 5 }
  0x10   : > { %s184_s16 = scalar_lea.vmem %s598_s0, %s464_s13  ;;  %s567_s24 = scalar_lea.vmem %s600_s2, %s465_s21 }
  0x11   : > { %v458_v1 = vld.sshfl [vmem:[%s184_s16] sm:$0x33 pattern:$0x76325410]  ;;  %204 = vst.msk [vmem:[%s567_s24 + $0x10] sm:$0xff] %vm201_vm2, %v521_v6  ;;  %202 = vst.msk [vmem:[%s567_s24] sm:$0xff] %vm201_vm2, %v521_v6 }
  0x12   : > { %v229_v2 = vcombine.high %v458_v1, %v458_v1  ;;  %v239_v3 = vsel %vm237_vm0, %v458_v1, 0  ;;  %203 = vst.msk [vmem:[%s567_s24 + $0x8] sm:$0xff] %vm201_vm2, %v521_v6  ;;  %205 = vst.msk [vmem:[%s567_s24 + $0x18] sm:$0xff] %vm201_vm2, %v521_v6 }
  0x14   : > { %459 = vmatprep.subr.msk.bf16.mxu0 %vm237_vm0, %v229_v2  ;;  %466 = vmatprep.subr.msk.bf16.mxu1 %vm237_vm0, %v229_v2 }
  0x15   : > { %245 = vmatpush1.bf16.msra.mxu0 %v239_v3  ;;  %467 = vmatpush1.bf16.msra.mxu1 %v239_v3 }
  0x18   : > { %460 = vmatmul.mubr.msk.bf16.vlgmr.msra.gmra.mrb[0].mxu0 %vm230_vm1, %v494_v4  ;;  %461 = vmatmul.mubr.msk.bf16.vlgmr.msra.gmra.mrb[0].mxu1 %vm230_vm1, %v495_v5  ;;  %v299_v31 = vld [vmem:[%s567_s24 + $0x10] sm:$0xff]  ;;  %v297_v32 = vld [vmem:[%s567_s24] sm:$0xff] }
  0x19   : > { %v300_v37 = vld [vmem:[%s567_s24 + $0x18] sm:$0xff]  ;;  %v298_v38 = vld [vmem:[%s567_s24 + $0x8] sm:$0xff] }
  0xeb   : > { %v278_v7 = vpop.f32.mrb[0].mxu0  ;;  %v288_v8 = vpop.f32.mrb[0].mxu1 }
  0xec   : > { %v326_v9 = vmul.f32 %v278_v7, %v278_v7  ;;  %v330_v10 = vmul.f32 %v288_v8, %v288_v8  ;;  %v280_v11 = vpop.f32.mrb[1].mxu0  ;;  %v290_v12 = vpop.f32.mrb[1].mxu1 }
  0xed   : > { %v327_v13 = vmul.f32 %v280_v11, %v280_v11  ;;  %v331_v14 = vmul.f32 %v290_v12, %v290_v12  ;;  %v282_v15 = vpop.f32.mrb[2].mxu0  ;;  %v292_v16 = vpop.f32.mrb[2].mxu1  ;;  %v307_v17 = vadd.f32 %v290_v12, %v288_v8  ;;  %v301_v18 = vadd.f32 %v280_v11, %v278_v7 }
  0xee   : > { %v328_v19 = vmul.f32 %v282_v15, %v282_v15  ;;  %v332_v20 = vmul.f32 %v292_v16, %v292_v16  ;;  %v284_v21 = vpop.f32.mrb[3].mxu0  ;;  %v294_v22 = vpop.f32.mrb[3].mxu1 }
  0xef   : > { %v304_v23 = vadd.f32 %v284_v21, %v282_v15  ;;  %v329_v24 = vmul.f32 %v284_v21, %v284_v21  ;;  %v310_v25 = vadd.f32 %v294_v22, %v292_v16  ;;  %v333_v26 = vmul.f32 %v294_v22, %v294_v22  ;;  %308 = vadd.xlane.f32.xlu1 %v307_v17 }
  0xf0   : > { %302 = vadd.xlane.f32.xlu0 %v301_v18  ;;  %v334_v27 = vadd.f32 %v327_v13, %v326_v9  ;;  %v340_v28 = vadd.f32 %v331_v14, %v330_v10 }
  0xf1   : > { %v337_v29 = vadd.f32 %v329_v24, %v328_v19  ;;  %v343_v30 = vadd.f32 %v333_v26, %v332_v20 }
  0xf3   : > { %311 = vadd.xlane.f32.xlu1 %v310_v25 }
  0xf4   : > { %305 = vadd.xlane.f32.xlu0 %v304_v23 }
  0xf7   : > { %338 = vadd.xlane.f32.xlu1 %v337_v29 }
  0xf8   : > { %335 = vadd.xlane.f32.xlu0 %v334_v27 }
  0xfb   : > { %344 = vadd.xlane.f32.xlu1 %v343_v30 }
  0xfc   : > { %341 = vadd.xlane.f32.xlu0 %v340_v28 }
 0x17c   : > { %v309_v33 = vpop.xlane.xlu1 %308 }
 0x17d   : > { %v315_v34 = vadd.f32 %v309_v33, %v299_v31  ;;  %v303_v35 = vpop.xlane.xlu0 %302 }
 0x17e   : > { %v313_v36 = vadd.f32 %v303_v35, %v297_v32 }
 0x17f   : > { %320 = vst.msk [vmem:[%s567_s24 + $0x10] sm:$0xff] %vm317_vm3, %v315_v34 }
 0x180   : > { %318 = vst.msk [vmem:[%s567_s24] sm:$0xff] %vm317_vm3, %v313_v36  ;;  %v312_v39 = vpop.xlane.xlu1 %311 }
 0x181   : > { %v316_v40 = vadd.f32 %v312_v39, %v300_v37  ;;  %v306_v41 = vpop.xlane.xlu0 %305 }
 0x182   : > { %v314_v42 = vadd.f32 %v306_v41, %v298_v38 }
 0x183   : > { %321 = vst.msk [vmem:[%s567_s24 + $0x18] sm:$0xff] %vm317_vm3, %v316_v40 }
 0x184   : > { %319 = vst.msk [vmem:[%s567_s24 + $0x8] sm:$0xff] %vm317_vm3, %v314_v42  ;;  %v339_v43 = vpop.xlane.xlu1 %338 }
 0x185   : > { %v336_v44 = vpop.xlane.xlu0 %335 }
 0x186   : > { %v324_v47 = vld [vmem:[%s567_s24 + $0x10] sm:$0xff] }
 0x187   : > { %v322_v45 = vld [vmem:[%s567_s24] sm:$0xff] }
 0x188   : > { %v346_v46 = vadd.f32 %v336_v44, %v322_v45  ;;  %v345_v50 = vpop.xlane.xlu1 %344 }
 0x189   : > { %v342_v48 = vpop.xlane.xlu0 %341 }
 0x18a   : > { %351 = vst.msk [vmem:[%s567_s24] sm:$0xff] %vm350_vm4, %v346_v46  ;;  %v325_v49 = vld [vmem:[%s567_s24 + $0x18] sm:$0xff]  ;;  %v348_v51 = vadd.f32 %v342_v48, %v324_v47 }
 0x18b   : > { %v323_v52 = vld [vmem:[%s567_s24 + $0x8] sm:$0xff]  ;;  %v349_v53 = vadd.f32 %v345_v50, %v325_v49 }
 0x18c   : > { %v347_v54 = vadd.f32 %v339_v43, %v323_v52  ;;  %353 = vst.msk [vmem:[%s567_s24 + $0x10] sm:$0xff] %vm350_vm4, %v348_v51 }
 0x18d   : > { %354 = vst.msk [vmem:[%s567_s24 + $0x18] sm:$0xff] %vm350_vm4, %v349_v53 }
 0x18e   : > { %352 = vst.msk [vmem:[%s567_s24 + $0x8] sm:$0xff] %vm350_vm4, %v347_v54 }
 0x18f PF: > { %s12_s11 = sadd.s32 1, %s518_s11   ;;  %s601_s9 = smov %s514_s10 }
 0x190   : > { %p9_p5 = scmp.ge.s32.totalorder %s12_s11, 4   ;;  %s602_s10 = smov %s604_s12 }
 0x192   :  { %11 = sbr.rel (!%p9_p5) target bundleno = 2 (0x2), region = 62 }

</bundles_post_ra>
